<compile_context>
chip_gen: v7x
topology: tpu7x:2x2x1
jax: 0.10.0
libtpu: 0.0.40
codegen_flags: <defaults>
</compile_context>

<pallas_src>
import math

import jax
import jax.numpy as jnp
from jax.experimental import pallas as pl
from jax.experimental.pallas import tpu as pltpu


def _round_up(a, b):
    return ((a + b - 1) // b) * b


def _make_layernorm_kernel(eps, d, p):
    """LayerNorm over packed rows.

    Block layout: (TM, p*d).  Each physical row holds `p` logical rows of
    length `d` packed along the lane axis (lane-dense loads/stores).  All
    statistics are per logical row; std is unbiased (ddof=1) and eps is added
    to std (not var) to match the PyTorch module exactly.
    """
    inv_denom = 1.0 / float(max(d - 1, 1))

    def kernel(x_ref, g_ref, b_ref, o_ref):
        x = x_ref[...].astype(jnp.float32)          # (TM, p*d)
        g = g_ref[...].astype(jnp.float32)          # (1,  p*d)
        b = b_ref[...].astype(jnp.float32)          # (1,  p*d)

        parts = []
        for k in range(p):                          # static, small unroll
            xk = x[:, k * d:(k + 1) * d]            # (TM, d) logical row k
            mean = jnp.mean(xk, axis=-1, keepdims=True)
            c = xk - mean
            var = jnp.sum(c * c, axis=-1, keepdims=True) * inv_denom
            # Exact (not approx) per-row reciprocal: a (TM,1) divide replaces
            # a (TM,d) divide without breaking 1e-5 parity with the reference.
            inv = 1.0 / (jnp.sqrt(var) + eps)
            parts.append(c * inv)
        y = parts[0] if p == 1 else jnp.concatenate(parts, axis=-1)
        o_ref[...] = (g * y + b).astype(o_ref.dtype)

    return kernel


def layer_norm_pallas(x, gamma, beta, *, eps=1e-6):
    """LayerNorm over the last axis of x. gamma/beta have shape (d_model,)."""
    orig_shape = x.shape
    d = orig_shape[-1]
    n = math.prod(orig_shape[:-1])
    dtype = x.dtype

    # --- Lane-dense packing factor -----------------------------------------
    # Fold p logical rows into one physical row so the lane width is a
    # multiple of 128 whenever d alone is not (e.g. demo d=32 -> p=4).
    p = 1
    if d % 128 != 0:
        cand = 128 // math.gcd(d, 128)
        if 1 < cand <= 16 and n % cand == 0:
            p = cand
    n_rows = n // p
    pd = p * d

    x2d = x.reshape(n_rows, pd)                       # free, row-major
    g2d = jnp.tile(gamma.reshape(1, d), (1, p))       # tiny resident params
    b2d = jnp.tile(beta.reshape(1, d), (1, p))

    elem = jnp.dtype(dtype).itemsize
    row_bytes = pd * elem

    # --- VMEM budget ---------------------------------------------------------
    try:
        cap = int(getattr(pltpu.get_tpu_info(), "vmem_capacity_bytes", 64 << 20))
    except Exception:
        cap = 64 << 20
    budget_cap = (cap * 3) // 4                       # headroom on v7x's 64 MiB

    def vmem_need(tm):
        io = 2 * tm * pd * (elem + elem)              # double-buffered in + out
        temps = 3 * tm * pd * 4                       # f32 x, centered, result
        params = 4 * pd * 4
        return io + temps + params + (2 << 20)        # slack

    # --- Tile size chosen by bytes -------------------------------------------
    target_tile_bytes = min(4 << 20, max(1 << 20, budget_cap // 12))
    if n_rows < 8:
        tm = n_rows                                   # block row dim == full dim
    else:
        tm = max(8, ((target_tile_bytes // max(row_bytes, 1)) // 8) * 8)
        tm = min(tm, _round_up(n_rows, 8))
        # Keep >=2 grid steps when possible so the parallel row axis actually
        # shards across both v7x TensorCores.
        while tm > 8 and pl.cdiv(n_rows, tm) < 2:
            tm = max(8, _round_up(tm // 2, 8))
        while tm > 8 and vmem_need(tm) > budget_cap:
            tm = max(8, _round_up(tm // 2, 8))

    vmem_limit = int(max(4 << 20, min(budget_cap, vmem_need(tm))))
    grid = (pl.cdiv(n_rows, tm),)                     # ragged last block, no pad

    # TODO(synk): fusing this LayerNorm into the producing decoder layer's
    # epilogue (or aliasing input->output) would remove one full HBM round
    # trip, but the producer is an external dependency here.
    out2d = pl.pallas_call(
        _make_layernorm_kernel(float(eps), d, p),
        out_shape=jax.ShapeDtypeStruct((n_rows, pd), dtype),
        grid_spec=pltpu.PrefetchScalarGridSpec(
            num_scalar_prefetch=0,
            grid=grid,
            in_specs=[
                pl.BlockSpec((tm, pd), lambda i: (i, 0)),   # activation rows
                pl.BlockSpec((1, pd), lambda i: (0, 0)),    # a_2 (resident)
                pl.BlockSpec((1, pd), lambda i: (0, 0)),    # b_2 (resident)
            ],
            out_specs=pl.BlockSpec((tm, pd), lambda i: (i, 0)),
        ),
        compiler_params=pltpu.CompilerParams(
            dimension_semantics=("parallel",),
            vmem_limit_bytes=vmem_limit,
        ),
    )(x2d, g2d, b2d)

    return out2d.reshape(orig_shape)


def decoder_forward(x, memory, src_mask, tgt_mask, layers, norm_gamma, norm_beta,
                    *, eps=1e-6):
    """Decoder.forward: run the N stacked layers, then the final LayerNorm.

    `layers` is a sequence of callables (x, memory, src_mask, tgt_mask) -> x,
    mirroring clones(layer, N) in the PyTorch module.
    """
    # TODO(synk): DecoderLayer (self-attn / src-attn / FFN sublayers) is an
    # external dependency not defined in the provided spec; only the final
    # LayerNorm is lowered to Pallas here.
    for layer in layers:
        x = layer(x, memory, src_mask, tgt_mask)
    return layer_norm_pallas(x, norm_gamma, norm_beta, eps=eps)


if __name__ == "__main__":
    batch, tgt_seq, src_seq, d_model, n_layers = 2, 8, 10, 32, 6
    eps = 1e-6

    key = jax.random.PRNGKey(0)
    kx, km, kg, kb = jax.random.split(key, 4)

    x = jax.random.normal(kx, (batch, tgt_seq, d_model), dtype=jnp.float32)
    memory = jax.random.normal(km, (batch, src_seq, d_model), dtype=jnp.float32)
    src_mask = jnp.ones((batch, 1, src_seq), dtype=jnp.float32)
    tgt_mask = jnp.ones((batch, tgt_seq, tgt_seq), dtype=jnp.float32)

    # LayerNorm params (a_2 init=ones, b_2 init=zeros in the module); perturb
    # deterministically so the affine part is actually exercised.
    gamma = 1.0 + 0.1 * jax.random.normal(kg, (d_model,), dtype=jnp.float32)
    beta = 0.1 * jax.random.normal(kb, (d_model,), dtype=jnp.float32)

    # Identity placeholders for the externally-defined DecoderLayer (see TODO);
    # they only preserve the N-layer loop structure of Decoder.forward.
    layers = [(lambda x_, m_, sm_, tm_: x_) for _ in range(n_layers)]

    out = decoder_forward(x, memory, src_mask, tgt_mask, layers, gamma, beta, eps=eps)
    out = jax.block_until_ready(out)

    # Plain-JAX reference of the PyTorch LayerNorm (unbiased std, eps added to
    # std) applied after the (identity) layer stack.
    mean = x.mean(-1, keepdims=True)
    std = jnp.std(x, axis=-1, ddof=1, keepdims=True)
    ref = gamma * (x - mean) / (std + eps) + beta

    assert out.shape == (batch, tgt_seq, d_model)
    assert jnp.allclose(out, ref, atol=1e-5, rtol=1e-5)

    print("KERNEL_OK")
</pallas_src>

<mosaic_0001>
module attributes {stable_mosaic.version = 11 : i64} {
  func.func @kernel(%arg0: i32, %arg1: memref<4x128xf32, #tpu.memory_space<vmem>>, %arg2: memref<1x128xf32, #tpu.memory_space<vmem>>, %arg3: memref<1x128xf32, #tpu.memory_space<vmem>>, %arg4: memref<4x128xf32, #tpu.memory_space<vmem>>) attributes {dimension_semantics = [#tpu.dimension_semantics<parallel>], iteration_bounds = array<i64: 1>, scalar_prefetch = 0 : i64, scratch_operands = 0 : i64, tpu.core_type = #tpu.core_type<tc>, window_params = [{transform_indices = @transform_0, window_bounds = array<i64: 4, 128>}, {pipeline_mode = #tpu.pipeline_mode<synchronous>, transform_indices = @transform_1, window_bounds = array<i64: 1, 128>}, {pipeline_mode = #tpu.pipeline_mode<synchronous>, transform_indices = @transform_2, window_bounds = array<i64: 1, 128>}, {transform_indices = @transform_3, window_bounds = array<i64: 4, 128>}]} {
    %c0 = arith.constant 0 : index
    %c0_0 = arith.constant 0 : index
    %0 = vector.load %arg1[%c0, %c0_0] : memref<4x128xf32, #tpu.memory_space<vmem>>, vector<4x128xf32>
    %c0_1 = arith.constant 0 : index
    %c0_2 = arith.constant 0 : index
    %1 = vector.load %arg2[%c0_1, %c0_2] : memref<1x128xf32, #tpu.memory_space<vmem>>, vector<1x128xf32>
    %c0_3 = arith.constant 0 : index
    %c0_4 = arith.constant 0 : index
    %2 = vector.load %arg3[%c0_3, %c0_4] : memref<1x128xf32, #tpu.memory_space<vmem>>, vector<1x128xf32>
    %3 = vector.extract_strided_slice %0 {offsets = [0, 0], sizes = [4, 32], strides = [1, 1]} : vector<4x128xf32> to vector<4x32xf32>
    %cst = arith.constant dense<0.000000e+00> : vector<4xf32>
    %4 = vector.multi_reduction <add>, %3, %cst [1] : vector<4x32xf32> to vector<4xf32>
    %5 = vector.shape_cast %4 : vector<4xf32> to vector<4x1xf32>
    %cst_5 = arith.constant 3.200000e+01 : f32
    %6 = vector.broadcast %cst_5 : f32 to vector<4x1xf32>
    %7 = arith.divf %5, %6 : vector<4x1xf32>
    %8 = vector.broadcast %7 : vector<4x1xf32> to vector<4x32xf32>
    %9 = arith.subf %3, %8 : vector<4x32xf32>
    %10 = arith.mulf %9, %9 : vector<4x32xf32>
    %cst_6 = arith.constant dense<0.000000e+00> : vector<4xf32>
    %11 = vector.multi_reduction <add>, %10, %cst_6 [1] : vector<4x32xf32> to vector<4xf32>
    %12 = vector.shape_cast %11 : vector<4xf32> to vector<4x1xf32>
    %cst_7 = arith.constant 0.0322580636 : f32
    %13 = vector.broadcast %cst_7 : f32 to vector<4x1xf32>
    %14 = arith.mulf %12, %13 : vector<4x1xf32>
    %15 = math.sqrt %14 : vector<4x1xf32>
    %cst_8 = arith.constant 9.99999997E-7 : f32
    %16 = vector.broadcast %cst_8 : f32 to vector<4x1xf32>
    %17 = arith.addf %15, %16 : vector<4x1xf32>
    %cst_9 = arith.constant 1.000000e+00 : f32
    %18 = vector.broadcast %cst_9 : f32 to vector<4x1xf32>
    %19 = arith.divf %18, %17 : vector<4x1xf32>
    %20 = vector.broadcast %19 : vector<4x1xf32> to vector<4x32xf32>
    %21 = arith.mulf %9, %20 : vector<4x32xf32>
    %22 = vector.extract_strided_slice %0 {offsets = [0, 32], sizes = [4, 32], strides = [1, 1]} : vector<4x128xf32> to vector<4x32xf32>
    %cst_10 = arith.constant dense<0.000000e+00> : vector<4xf32>
    %23 = vector.multi_reduction <add>, %22, %cst_10 [1] : vector<4x32xf32> to vector<4xf32>
    %24 = vector.shape_cast %23 : vector<4xf32> to vector<4x1xf32>
    %cst_11 = arith.constant 3.200000e+01 : f32
    %25 = vector.broadcast %cst_11 : f32 to vector<4x1xf32>
    %26 = arith.divf %24, %25 : vector<4x1xf32>
    %27 = vector.broadcast %26 : vector<4x1xf32> to vector<4x32xf32>
    %28 = arith.subf %22, %27 : vector<4x32xf32>
    %29 = arith.mulf %28, %28 : vector<4x32xf32>
    %cst_12 = arith.constant dense<0.000000e+00> : vector<4xf32>
    %30 = vector.multi_reduction <add>, %29, %cst_12 [1] : vector<4x32xf32> to vector<4xf32>
    %31 = vector.shape_cast %30 : vector<4xf32> to vector<4x1xf32>
    %cst_13 = arith.constant 0.0322580636 : f32
    %32 = vector.broadcast %cst_13 : f32 to vector<4x1xf32>
    %33 = arith.mulf %31, %32 : vector<4x1xf32>
    %34 = math.sqrt %33 : vector<4x1xf32>
    %cst_14 = arith.constant 9.99999997E-7 : f32
    %35 = vector.broadcast %cst_14 : f32 to vector<4x1xf32>
    %36 = arith.addf %34, %35 : vector<4x1xf32>
    %cst_15 = arith.constant 1.000000e+00 : f32
    %37 = vector.broadcast %cst_15 : f32 to vector<4x1xf32>
    %38 = arith.divf %37, %36 : vector<4x1xf32>
    %39 = vector.broadcast %38 : vector<4x1xf32> to vector<4x32xf32>
    %40 = arith.mulf %28, %39 : vector<4x32xf32>
    %41 = vector.extract_strided_slice %0 {offsets = [0, 64], sizes = [4, 32], strides = [1, 1]} : vector<4x128xf32> to vector<4x32xf32>
    %cst_16 = arith.constant dense<0.000000e+00> : vector<4xf32>
    %42 = vector.multi_reduction <add>, %41, %cst_16 [1] : vector<4x32xf32> to vector<4xf32>
    %43 = vector.shape_cast %42 : vector<4xf32> to vector<4x1xf32>
    %cst_17 = arith.constant 3.200000e+01 : f32
    %44 = vector.broadcast %cst_17 : f32 to vector<4x1xf32>
    %45 = arith.divf %43, %44 : vector<4x1xf32>
    %46 = vector.broadcast %45 : vector<4x1xf32> to vector<4x32xf32>
    %47 = arith.subf %41, %46 : vector<4x32xf32>
    %48 = arith.mulf %47, %47 : vector<4x32xf32>
    %cst_18 = arith.constant dense<0.000000e+00> : vector<4xf32>
    %49 = vector.multi_reduction <add>, %48, %cst_18 [1] : vector<4x32xf32> to vector<4xf32>
    %50 = vector.shape_cast %49 : vector<4xf32> to vector<4x1xf32>
    %cst_19 = arith.constant 0.0322580636 : f32
    %51 = vector.broadcast %cst_19 : f32 to vector<4x1xf32>
    %52 = arith.mulf %50, %51 : vector<4x1xf32>
    %53 = math.sqrt %52 : vector<4x1xf32>
    %cst_20 = arith.constant 9.99999997E-7 : f32
    %54 = vector.broadcast %cst_20 : f32 to vector<4x1xf32>
    %55 = arith.addf %53, %54 : vector<4x1xf32>
    %cst_21 = arith.constant 1.000000e+00 : f32
    %56 = vector.broadcast %cst_21 : f32 to vector<4x1xf32>
    %57 = arith.divf %56, %55 : vector<4x1xf32>
    %58 = vector.broadcast %57 : vector<4x1xf32> to vector<4x32xf32>
    %59 = arith.mulf %47, %58 : vector<4x32xf32>
    %60 = vector.extract_strided_slice %0 {offsets = [0, 96], sizes = [4, 32], strides = [1, 1]} : vector<4x128xf32> to vector<4x32xf32>
    %cst_22 = arith.constant dense<0.000000e+00> : vector<4xf32>
    %61 = vector.multi_reduction <add>, %60, %cst_22 [1] : vector<4x32xf32> to vector<4xf32>
    %62 = vector.shape_cast %61 : vector<4xf32> to vector<4x1xf32>
    %cst_23 = arith.constant 3.200000e+01 : f32
    %63 = vector.broadcast %cst_23 : f32 to vector<4x1xf32>
    %64 = arith.divf %62, %63 : vector<4x1xf32>
    %65 = vector.broadcast %64 : vector<4x1xf32> to vector<4x32xf32>
    %66 = arith.subf %60, %65 : vector<4x32xf32>
    %67 = arith.mulf %66, %66 : vector<4x32xf32>
    %cst_24 = arith.constant dense<0.000000e+00> : vector<4xf32>
    %68 = vector.multi_reduction <add>, %67, %cst_24 [1] : vector<4x32xf32> to vector<4xf32>
    %69 = vector.shape_cast %68 : vector<4xf32> to vector<4x1xf32>
    %cst_25 = arith.constant 0.0322580636 : f32
    %70 = vector.broadcast %cst_25 : f32 to vector<4x1xf32>
    %71 = arith.mulf %69, %70 : vector<4x1xf32>
    %72 = math.sqrt %71 : vector<4x1xf32>
    %cst_26 = arith.constant 9.99999997E-7 : f32
    %73 = vector.broadcast %cst_26 : f32 to vector<4x1xf32>
    %74 = arith.addf %72, %73 : vector<4x1xf32>
    %cst_27 = arith.constant 1.000000e+00 : f32
    %75 = vector.broadcast %cst_27 : f32 to vector<4x1xf32>
    %76 = arith.divf %75, %74 : vector<4x1xf32>
    %77 = vector.broadcast %76 : vector<4x1xf32> to vector<4x32xf32>
    %78 = arith.mulf %66, %77 : vector<4x32xf32>
    %79 = tpu.concatenate %21, %40, %59, %78 in 1 : vector<4x32xf32>, vector<4x32xf32>, vector<4x32xf32>, vector<4x32xf32> -> vector<4x128xf32>
    %80 = vector.broadcast %1 : vector<1x128xf32> to vector<4x128xf32>
    %81 = arith.mulf %80, %79 : vector<4x128xf32>
    %82 = vector.broadcast %2 : vector<1x128xf32> to vector<4x128xf32>
    %83 = arith.addf %81, %82 : vector<4x128xf32>
    %c0_28 = arith.constant 0 : index
    %c0_29 = arith.constant 0 : index
    %84 = vector.load %arg4[%c0_28, %c0_29] : memref<4x128xf32, #tpu.memory_space<vmem>>, vector<4x128xf32>
    tpu.vector_store %arg4[%c0_28, %c0_29], %83 {strides = array<i32>} : memref<4x128xf32, #tpu.memory_space<vmem>>, vector<4x128xf32>,
    return
  }
  func.func @transform_0(%arg0: i32) -> (i32, i32) {
    %c0_i32 = arith.constant 0 : i32
    %c0_i32_0 = arith.constant 0 : i32
    return %arg0, %c0_i32 : i32, i32
  }
  func.func @transform_1(%arg0: i32) -> (i32, i32) {
    %c0_i32 = arith.constant 0 : i32
    %c0_i32_0 = arith.constant 0 : i32
    %c0_i32_1 = arith.constant 0 : i32
    return %c0_i32, %c0_i32_0 : i32, i32
  }
  func.func @transform_2(%arg0: i32) -> (i32, i32) {
    %c0_i32 = arith.constant 0 : i32
    %c0_i32_0 = arith.constant 0 : i32
    %c0_i32_1 = arith.constant 0 : i32
    return %c0_i32, %c0_i32_0 : i32, i32
  }
  func.func @transform_3(%arg0: i32) -> (i32, i32) {
    %c0_i32 = arith.constant 0 : i32
    %c0_i32_0 = arith.constant 0 : i32
    return %arg0, %c0_i32 : i32, i32
  }
}

</mosaic_0001>

<bundles_post_ra>
// kernel: tpu_custom_call.1
= control target key start
LH: loop header
LB: loop body
LE: loop exit
PB: predicated region body
PF: predicated region fallthrough
CT: control target
= control target key end

     0   :  { %8 = vsyncpa [#allocation3], 0  ;;  %s328_s0 = inlined_call_operand.hbm [shape: f32[4,128], index: 0, kind: input, shape index: {}]   ;;  %s329_s1 = inlined_call_operand.vmem [shape: f32[1,128], index: 1, kind: input, shape index: {}]   ;;  %s330_s2 = inlined_call_operand.vmem [shape: f32[1,128], index: 2, kind: input, shape index: {}]   ;;  %s331_s3 = inlined_call_operand.hbm [shape: f32[4,128], index: 3, kind: output, shape index: {}]  }
   0x1   :  { %9 = vsyncpa [#allocation4], 0  ;;  %s245_s12 = smov [#allocation2]   ;;  %s197_s16 = scalar_lea.hbm %s328_s0, 64 }
   0x2   :  { %s16_s13 = sshll.u32 %s245_s12, 4  ;;  %p198_p0 = scmp.ne.s32.totalorder %s328_s0, %s197_s16  ;;  %s17_s13 = int_to_ptr.vmem [resolvable:$true] %s16_s13 }
   0x3   :  { %p201_p1 = scmp.lt.u32.totalorder %s197_s16, %s328_s0 }
   0x5   :  { %p203_p2 = pnand %p201_p1, %p198_p0 }
   0x7   :  { %206 = shalt.err (!%p203_p2)
}
   0x8   :  { %s207_s21 = scalar_lea.vmem %s17_s13, 64  ;;  %p212_p4 = scmp.lt.s32.totalorder %s17_s13, %s17_s13 }
   0x9   :  { %p208_p3 = scmp.ne.s32.totalorder %s17_s13, %s207_s21  ;;  %p213_p5 = scmp.lt.s32.totalorder %s207_s21, %s207_s21 }
   0xb   :  { %p214_p6 = por %p213_p5, %p212_p4 }
   0xd   :  { %p215_p7 = pnand %p214_p6, %p208_p3 }
   0xf   :  { %218 = shalt.err (!%p215_p7)
}
  0x10   :  { %19 = dma.hbm_to_vmem [thread:$0]  %s328_s0, 64, %s17_s13, [#allocation3]  }
  0x11   :  { %241 = dma.done.wait [#allocation3], 64  }
  0x12   :  { %242 = vsyncadd [#allocation3], 4294967232  ;;  %v27_v0 = vld [vmem:[#allocation2] sm:$0xf]  ;;  %s246_s24 = smov 96   ;;  %s247_s25 = smov 32  }
  0x13   :  { %54 = vrot.lane.b32.xlu0 %v27_v0, %s246_s24  ;;  %110 = vrot.lane.b32.xlu1 %v27_v0, %s247_s25  ;;  %s248_s26 = smov 64   ;;  %vm30_vm0 = vcmask 257024   ;;  %vm138_vm9 = vcmask 261120   ;;  %vm140_vm10 = vcmask 523264   ;;  %vm142_vm11 = vcmask 785408   ;;  %s249_s30 = smov [#allocation5]  }
  0x14   :  { %v31_v3 = vsel %vm30_vm0, %v27_v0, 0.0  ;;  %s165_s4 = sshll.u32 %s249_s30, 4  ;;  %s166_s4 = int_to_ptr.vmem [resolvable:$true] %s165_s4 }
  0x15   :  { %s219_s5 = scalar_lea.vmem %s166_s4, 64  ;;  %p224_p9 = scmp.lt.s32.totalorder %s166_s4, %s166_s4 }
  0x16   :  { %p220_p8 = scmp.ne.s32.totalorder %s166_s4, %s219_s5  ;;  %p225_p10 = scmp.lt.s32.totalorder %s219_s5, %s219_s5 }
  0x17   :  { %82 = vrot.lane.b32.xlu0 %v27_v0, %s248_s26 }
  0x18   :  { %p226_p11 = por %p225_p10, %p224_p9 }
  0x1a   :  { %p227_p12 = pnand %p226_p11, %p220_p8 }
  0x85   :  { %v55_v1 = vpop.permute.xlu0 %54  ;;  %v111_v5 = vpop.permute.xlu1 %110 }
  0x86   :  { %v57_v2 = vsel %vm30_vm0, %v55_v1, 0.0  ;;  %v113_v7 = vsel %vm30_vm0, %v111_v5, 0.0 }
  0x87   :  { %58 = vadd.xlane.f32.xlu1 %v57_v2 }
  0x89   :  { %v83_v4 = vpop.permute.xlu0 %82 }
  0x8a   :  { %v85_v6 = vsel %vm30_vm0, %v83_v4, 0.0 }
  0x8b   :  { %86 = vadd.xlane.f32.xlu0 %v85_v6  ;;  %32 = vadd.xlane.f32.xlu1 %v31_v3  ;;  %v174_v6 = vld [vmem:[%s329_s1] ss:$0 sm:$0xff] }
  0x8f   :  { %114 = vadd.xlane.f32.xlu0 %v113_v7 }
 0x114   :  { %v59_v8 = vpop.xlane.xlu1 %58 }
 0x115   :  { %v60_v9 = vmul.f32 0.03125, %v59_v8 }
 0x117   :  { %v286_v10 = vsub.f32 %v27_v0, %v60_v9 }
 0x118   :  { %v87_v11 = vpop.xlane.xlu0 %86  ;;  %v33_v20 = vpop.xlane.xlu1 %32 }
 0x119   :  { %v88_v12 = vmul.f32 0.03125, %v87_v11  ;;  %v62_v13 = vmul.f32 %v286_v10, %v286_v10  ;;  %v35_v21 = vmul.f32 0.03125, %v33_v20 }
 0x11b   :  { %v290_v14 = vsub.f32 %v27_v0, %v88_v12  ;;  %64 = vrot.lane.b32.xlu0 %v62_v13, %s246_s24  ;;  %v298_v22 = vsub.f32 %v27_v0, %v35_v21 }
 0x11c   :  { %v115_v15 = vpop.xlane.xlu0 %114 }
 0x11d   :  { %v116_v16 = vmul.f32 0.03125, %v115_v15  ;;  %v90_v17 = vmul.f32 %v290_v14, %v290_v14  ;;  %v37_v23 = vmul.f32 %v298_v22, %v298_v22 }
 0x11f   :  { %v294_v18 = vsub.f32 %v27_v0, %v116_v16  ;;  %92 = vrot.lane.b32.xlu1 %v90_v17, %s248_s26  ;;  %v38_v24 = vsel %vm30_vm0, %v37_v23, 0.0 }
 0x121   :  { %v118_v19 = vmul.f32 %v294_v18, %v294_v18 }
 0x123   :  { %120 = vrot.lane.b32.xlu1 %v118_v19, %s247_s25 }
 0x13a   :  { %39 = vadd.xlane.f32.xlu0 %v38_v24 }
 0x18d   :  { %v65_v25 = vpop.permute.xlu0 %64 }
 0x18e   :  { %v67_v26 = vsel %vm30_vm0, %v65_v25, 0.0 }
 0x18f   :  { %68 = vadd.xlane.f32.xlu1 %v67_v26 }
 0x191   :  { %v93_v27 = vpop.permute.xlu1 %92 }
 0x192   :  { %v95_v28 = vsel %vm30_vm0, %v93_v27, 0.0 }
 0x193   :  { %96 = vadd.xlane.f32.xlu0 %v95_v28 }
 0x195   :  { %v121_v29 = vpop.permute.xlu1 %120 }
 0x196   :  { %v123_v30 = vsel %vm30_vm0, %v121_v29, 0.0 }
 0x197   :  { %124 = vadd.xlane.f32.xlu0 %v123_v30 }
 0x1c7   :  { %v40_v31 = vpop.xlane.xlu0 %39 }
 0x1c8   :  { %v41_v32 = vmul.f32 0.032258064, %v40_v31 }
 0x1ca   :  { %181 = vrsqrt.f32 %v41_v32  ;;  %vm44_vm1 = vcmp.eq.f32.partialorder %v41_v32, inf  ;;  %v47_v41 = vand.u32 2147483648, %v41_v32  ;;  %vm46_vm2 = vcmp.eq.f32.partialorder %v41_v32, 0.0 }
 0x1d4   :  { %v182_v37 = vpop.eup %181 }
 0x1d5   :  { %v43_v39 = vmul.f32 %v182_v37, %v41_v32 }
 0x1d7   :  { %v45_v43 = vsel %vm44_vm1, %v41_v32, %v43_v39 }
 0x1d8   :  { %v48_v46 = vsel %vm46_vm2, %v47_v41, %v45_v43 }
 0x1d9   :  { %v49_v52 = vadd.f32 1e-06, %v48_v46 }
 0x21c   :  { %v69_v33 = vpop.xlane.xlu1 %68 }
 0x21d   :  { %v70_v34 = vmul.f32 0.032258064, %v69_v33 }
 0x21f   :  { %183 = vrsqrt.f32 %v70_v34  ;;  %vm73_vm3 = vcmp.eq.f32.partialorder %v70_v34, inf  ;;  %v76_v45 = vand.u32 2147483648, %v70_v34  ;;  %vm75_vm4 = vcmp.eq.f32.partialorder %v70_v34, 0.0 }
 0x220   :  { %v97_v35 = vpop.xlane.xlu0 %96 }
 0x221   :  { %v98_v36 = vmul.f32 0.032258064, %v97_v35 }
 0x223   :  { %185 = vrsqrt.f32 %v98_v36  ;;  %vm101_vm5 = vcmp.eq.f32.partialorder %v98_v36, inf  ;;  %v104_v53 = vand.u32 2147483648, %v98_v36  ;;  %vm103_vm6 = vcmp.eq.f32.partialorder %v98_v36, 0.0 }
 0x224   :  { %v125_v38 = vpop.xlane.xlu0 %124 }
 0x225   :  { %v126_v40 = vmul.f32 0.032258064, %v125_v38 }
 0x227   :  { %187 = vrsqrt.f32 %v126_v40  ;;  %vm129_vm7 = vcmp.eq.f32.partialorder %v126_v40, inf  ;;  %v132_v59 = vand.u32 2147483648, %v126_v40  ;;  %vm131_vm8 = vcmp.eq.f32.partialorder %v126_v40, 0.0 }
 0x229   :  { %v184_v42 = vpop.eup %183 }
 0x22a   :  { %v72_v44 = vmul.f32 %v184_v42, %v70_v34 }
 0x22c   :  { %v74_v47 = vsel %vm73_vm3, %v70_v34, %v72_v44 }
 0x22d   :  { %v186_v48 = vpop.eup %185  ;;  %v77_v49 = vsel %vm75_vm4, %v76_v45, %v74_v47 }
 0x22e   :  { %v78_v50 = vadd.f32 1e-06, %v77_v49  ;;  %v100_v51 = vmul.f32 %v186_v48, %v98_v36 }
 0x230   :  { %v102_v54 = vsel %vm101_vm5, %v98_v36, %v100_v51  ;;  %189 = vrcp.f32 %v78_v50 }
 0x231   :  { %v188_v55 = vpop.eup %187  ;;  %v105_v56 = vsel %vm103_vm6, %v104_v53, %v102_v54  ;;  %191 = vrcp.f32 %v49_v52 }
 0x232   :  { %v106_v57 = vadd.f32 1e-06, %v105_v56  ;;  %v128_v58 = vmul.f32 %v188_v55, %v126_v40 }
 0x234   :  { %193 = vrcp.f32 %v106_v57  ;;  %v130_v60 = vsel %vm129_vm7, %v126_v40, %v128_v58 }
 0x235   :  { %v133_v61 = vsel %vm131_vm8, %v132_v59, %v130_v60 }
 0x236   :  { %v134_v62 = vadd.f32 1e-06, %v133_v61 }
 0x238   :  { %195 = vrcp.f32 %v134_v62 }
 0x23a   :  { %v190_v63 = vpop.eup %189 }
 0x23b   :  { %v192_v0 = vpop.eup %191  ;;  %v81_v2 = vmul.f32 %v190_v63, %v286_v10  ;;  %v175_v10 = vld [vmem:[%s330_s2] ss:$0 sm:$0xff] }
 0x23c   :  { %v52_v4 = vmul.f32 %v192_v0, %v298_v22 }
 0x23e   :  { %v194_v1 = vpop.eup %193  ;;  %v139_v8 = vsel %vm138_vm9, %v52_v4, %v81_v2 }
 0x23f   :  { %v109_v3 = vmul.f32 %v194_v1, %v290_v14 }
 0x241   :  { %v141_v9 = vsel %vm140_vm10, %v139_v8, %v109_v3 }
 0x242   :  { %v196_v5 = vpop.eup %195 }
 0x243   :  { %v137_v7 = vmul.f32 %v196_v5, %v294_v18 }
 0x245   :  { %v143_v11 = vsel %vm142_vm11, %v141_v9, %v137_v7 }
 0x246   :  { %v150_v12 = vmul.f32 %v174_v6, %v143_v11 }
 0x248   :  { %v157_v13 = vadd.f32 %v175_v10, %v150_v12 }
 0x24a   :  { %158 = vst [vmem:[#allocation5] sm:$0xf] %v157_v13 }
 0x24b   :  { %230 = shalt.err (!%p227_p12)
}
 0x24c   :  { %s231_s7 = scalar_lea.hbm %s331_s3, 64 }
 0x24d   :  { %p232_p13 = scmp.ne.s32.totalorder %s331_s3, %s231_s7  ;;  %p235_p0 = scmp.lt.u32.totalorder %s231_s7, %s331_s3 }
 0x24f   :  { %p237_p1 = pnand %p235_p0, %p232_p13 }
 0x251   :  { %240 = shalt.err (!%p237_p1)
}
 0x252   :  { %168 = dma.vmem_to_hbm [thread:$0]  %s166_s4, 64, %s331_s3, [#allocation4]  }
 0x253   :  { %243 = dma.done.wait [#allocation4], 64  }
 0x254   :  { %244 = vsyncadd [#allocation4], 4294967232 }
 0x255   :  { %172 = vsyncpa [#allocation3], 1 }
 0x256   :  { %173 = vsyncpa [#allocation4], 1 }

</bundles_post_ra>
